<compile_context>
chip_gen: v7x
topology: tpu7x:2x2x1
jax: 0.10.0
libtpu: 0.0.40
codegen_flags: <defaults>
</compile_context>

<pallas_src>
import math
import jax
import jax.numpy as jnp
from jax.experimental import pallas as pl
from jax.experimental.pallas import tpu as pltpu

_TWO_PI_OVER_1E4 = 2.0 * math.pi / 10000.0


# ---------------------------------------------------------------------------
# One-time / once-per-call preprocessing (outside the grid loop).
# ---------------------------------------------------------------------------

def prepare_rotary_params(linear_w, linear_b):
    """One-time weight prep for concat mode: transpose the (H, 2H) nn.Linear
    weight to (2H, H) and reshape the bias to (1, H).  Call at model init so
    the HBM transpose is not re-emitted on every forward."""
    H = linear_b.shape[0]
    return jnp.asarray(linear_w).T, jnp.asarray(linear_b).reshape(1, H)


def _rotary_pe_table(emb_rows):
    """Interleaved rotary table (S, H) from raw embedding rows (S, H):

        out[:, 2i]   = (-1)**i * sin(emb[:, 2i] * 2*pi / 1e4)
        out[:, 2i+1] =            cos(emb[:, 2i] * 2*pi / 1e4)

    Computed once per forward in plain JAX — hoisted out of the kernel grid.
    """
    S, H = emb_rows.shape
    angle = emb_rows[:, 0::2].astype(jnp.float32) * _TWO_PI_OVER_1E4   # (S, H//2)
    sign = jnp.where(jnp.arange(H // 2) % 2 == 0, 1.0, -1.0).astype(jnp.float32)
    sin_a = jnp.sin(angle) * sign
    cos_a = jnp.cos(angle)
    return jnp.stack([sin_a, cos_a], axis=-1).reshape(S, H)


def _choose_row_tile(B, S, target_rows=512):
    """Row-tile size tm: a multiple of S (so one PE block serves every grid
    step) that divides B*S, preferably sublane-aligned and <= target_rows."""
    R = B * S
    if R <= target_rows:
        return R
    best = S if (S % 8 == 0) else R
    for k in range(1, B + 1):
        if B % k:
            continue
        tm = k * S
        if tm > target_rows:
            break
        if tm % 8 == 0:
            best = tm
    # TODO(synk): for very long sequences (S*H*4 bytes approaching VMEM,
    # especially v7x's 64 MiB) additionally tile along S and the weight N dim.
    return best


# ---------------------------------------------------------------------------
# Kernels (pure matmul / add — no transcendentals inside the grid loop).
# ---------------------------------------------------------------------------

def _concat_fused_kernel(x_ref, pe_ref, w_ref, b_ref, o_ref):
    # One K=2H MXU dot over the [x | pe] slab (H % 128 == 0 so the lane-dim
    # concat is tile-aligned).
    cat = jnp.concatenate(
        [x_ref[...].astype(jnp.float32), pe_ref[...]], axis=-1)       # (tm, 2H)
    acc = jnp.dot(cat, w_ref[...], preferred_element_type=jnp.float32)
    o_ref[...] = (acc + b_ref[...]).astype(o_ref.dtype)


def _concat_split_kernel(x_ref, pe_ref, wx_ref, wp_ref, b_ref, o_ref):
    # Fallback for H not a multiple of 128: two K=H dots, accumulate in f32.
    acc = jnp.dot(x_ref[...].astype(jnp.float32), wx_ref[...],
                  preferred_element_type=jnp.float32)
    acc = acc + jnp.dot(pe_ref[...], wp_ref[...],
                        preferred_element_type=jnp.float32)
    o_ref[...] = (acc + b_ref[...]).astype(o_ref.dtype)


def _add_kernel(x_ref, pe_ref, o_ref):
    o_ref[...] = (x_ref[...].astype(jnp.float32) + pe_ref[...]).astype(o_ref.dtype)


# ---------------------------------------------------------------------------
# Wrapper.
# ---------------------------------------------------------------------------

def rotary_encoding(x, emb_weight, linear_wT=None, linear_b2d=None, *,
                    concat=True, target_rows=512):
    """Pallas implementation of RotaryEncoding.forward.

    x:           (B, S, H) input.
    emb_weight:  (L, H) nn.Embedding weight, L >= S.
    linear_wT:   (2H, H) PRE-TRANSPOSED nn.Linear weight (concat mode) — from
                 prepare_rotary_params (do the transpose once at init).
    linear_b2d:  (1, H) bias (concat mode) — from prepare_rotary_params.
    """
    B, S, H = x.shape
    R = B * S

    # PE table: once per forward, outside the grid loop.
    pe = _rotary_pe_table(emb_weight[:S])                              # (S, H)

    tm = _choose_row_tile(B, S, target_rows)                           # tm % S == 0
    pe_tile = pe if tm == S else jnp.tile(pe, (tm // S, 1))            # (tm, H)
    x2d = x.reshape(R, H)
    grid = (R // tm,)

    row_spec = pl.BlockSpec((tm, H), lambda i: (i, 0))                 # streamed rows
    pe_spec = pl.BlockSpec((tm, H), lambda i: (0, 0))                  # grid-invariant
    cparams = pltpu.CompilerParams(dimension_semantics=("parallel",))

    if not concat:
        out2d = pl.pallas_call(
            _add_kernel,
            out_shape=jax.ShapeDtypeStruct((R, H), x.dtype),
            grid_spec=pltpu.PrefetchScalarGridSpec(
                num_scalar_prefetch=0, grid=grid,
                in_specs=[row_spec, pe_spec],
                out_specs=row_spec),
            compiler_params=cparams,
        )(x2d, pe_tile)
        return out2d.reshape(B, S, H)

    assert linear_wT is not None and linear_b2d is not None, \
        "concat mode needs prepared (2H, H) weight and (1, H) bias"

    if H % 128 == 0:
        kernel = _concat_fused_kernel
        weight_args = (linear_wT,)                                     # (2H, H)
        weight_specs = [pl.BlockSpec((2 * H, H), lambda i: (0, 0))]
    else:
        kernel = _concat_split_kernel
        weight_args = (linear_wT[:H], linear_wT[H:])                   # 2 x (H, H)
        weight_specs = [pl.BlockSpec((H, H), lambda i: (0, 0)),
                        pl.BlockSpec((H, H), lambda i: (0, 0))]

    out2d = pl.pallas_call(
        kernel,
        out_shape=jax.ShapeDtypeStruct((R, H), x.dtype),
        grid_spec=pltpu.PrefetchScalarGridSpec(
            num_scalar_prefetch=0, grid=grid,
            in_specs=[row_spec, pe_spec, *weight_specs,
                      pl.BlockSpec((1, H), lambda i: (0, 0))],
            out_specs=row_spec),
        compiler_params=cparams,
    )(x2d, pe_tile, *weight_args, linear_b2d)
    return out2d.reshape(B, S, H)


# ---------------------------------------------------------------------------
# Pure-JAX reference mirroring the PyTorch forward exactly.
# ---------------------------------------------------------------------------

def rotary_encoding_ref(x, emb_weight, linear_w=None, linear_b=None, *, concat=True):
    B, S, H = x.shape
    pe_raw = emb_weight[:S]                                  # positions arange(S)
    angles = pe_raw / 10000.0
    angle_rads = angles[:, 0::2] * 2.0 * math.pi
    signs = jnp.where(jnp.arange(H // 2) % 2 == 0, 1.0, -1.0)
    sin_a = jnp.sin(angle_rads) * signs
    cos_a = jnp.cos(angle_rads)
    pe = jnp.stack([sin_a, cos_a], axis=-1).reshape(S, H)
    pe_b = jnp.broadcast_to(pe, (B, S, H))
    if concat:
        cat = jnp.concatenate([x, pe_b], axis=-1)
        return cat @ linear_w.T + linear_b
    return x + pe_b


if __name__ == "__main__":
    key = jax.random.PRNGKey(0)

    def run_case(B, S, H, L, case_key):
        k_emb, k_x, k_w, k_b = jax.random.split(case_key, 4)
        # nn.Embedding init ~ N(0, 1); nn.Linear init ~ U(-1/sqrt(fan_in), +).
        emb_weight = jax.random.normal(k_emb, (L, H), dtype=jnp.float32)
        x = jax.random.normal(k_x, (B, S, H), dtype=jnp.float32)
        bound = 1.0 / math.sqrt(2 * H)
        linear_w = jax.random.uniform(k_w, (H, 2 * H), dtype=jnp.float32,
                                      minval=-bound, maxval=bound)
        linear_b = jax.random.uniform(k_b, (H,), dtype=jnp.float32,
                                      minval=-bound, maxval=bound)

        # One-time weight prep ("model init"), hoisted out of the call path.
        w_t, bias = prepare_rotary_params(linear_w, linear_b)

        # Concat mode (position_concatenation=True).
        out_cat = jax.block_until_ready(
            rotary_encoding(x, emb_weight, w_t, bias, concat=True))
        ref_cat = rotary_encoding_ref(x, emb_weight, linear_w, linear_b, concat=True)
        assert out_cat.shape == (B, S, H)
        err = float(jnp.max(jnp.abs(out_cat - ref_cat)))
        assert jnp.allclose(out_cat, ref_cat, rtol=1e-4, atol=1e-4), err

        # Add mode (position_concatenation=False).
        out_add = jax.block_until_ready(
            rotary_encoding(x, emb_weight, concat=False))
        ref_add = rotary_encoding_ref(x, emb_weight, concat=False)
        err = float(jnp.max(jnp.abs(out_add - ref_add)))
        assert jnp.allclose(out_add, ref_add, rtol=1e-5, atol=1e-5), err

    k1, k2 = jax.random.split(key)
    # Lane-dense config (H % 128 == 0): exercises the fused K=2H MXU path.
    run_case(B=2, S=8, H=128, L=16, case_key=k1)
    # Small-H config (H = 32): exercises the split two-dot fallback path.
    run_case(B=2, S=8, H=32, L=16, case_key=k2)

    print("KERNEL_OK")
</pallas_src>

<mosaic_0001>
module attributes {stable_mosaic.version = 11 : i64} {
  func.func @_concat_fused_kernel(%arg0: i32, %arg1: memref<16x128xf32, #tpu.memory_space<vmem>>, %arg2: memref<16x128xf32, #tpu.memory_space<vmem>>, %arg3: memref<256x128xf32, #tpu.memory_space<vmem>>, %arg4: memref<1x128xf32, #tpu.memory_space<vmem>>, %arg5: memref<16x128xf32, #tpu.memory_space<vmem>>) attributes {dimension_semantics = [#tpu.dimension_semantics<parallel>], iteration_bounds = array<i64: 1>, scalar_prefetch = 0 : i64, scratch_operands = 0 : i64, tpu.core_type = #tpu.core_type<tc>, window_params = [{transform_indices = @transform_0, window_bounds = array<i64: 16, 128>}, {pipeline_mode = #tpu.pipeline_mode<synchronous>, transform_indices = @transform_1, window_bounds = array<i64: 16, 128>}, {pipeline_mode = #tpu.pipeline_mode<synchronous>, transform_indices = @transform_2, window_bounds = array<i64: 256, 128>}, {pipeline_mode = #tpu.pipeline_mode<synchronous>, transform_indices = @transform_3, window_bounds = array<i64: 1, 128>}, {transform_indices = @transform_4, window_bounds = array<i64: 16, 128>}]} {
    %c0 = arith.constant 0 : index
    %c0_0 = arith.constant 0 : index
    %0 = vector.load %arg1[%c0, %c0_0] : memref<16x128xf32, #tpu.memory_space<vmem>>, vector<16x128xf32>
    %c0_1 = arith.constant 0 : index
    %c0_2 = arith.constant 0 : index
    %1 = vector.load %arg2[%c0_1, %c0_2] : memref<16x128xf32, #tpu.memory_space<vmem>>, vector<16x128xf32>
    %2 = tpu.concatenate %0, %1 in 1 : vector<16x128xf32>, vector<16x128xf32> -> vector<16x256xf32>
    %c0_3 = arith.constant 0 : index
    %c0_4 = arith.constant 0 : index
    %3 = vector.load %arg3[%c0_3, %c0_4] : memref<256x128xf32, #tpu.memory_space<vmem>>, vector<256x128xf32>
    %cst = arith.constant dense<0.000000e+00> : vector<16x128xf32>
    %4 = tpu.matmul %2, %3, %cst {dimension_numbers = #tpu.dot_dimension_numbers<[1], [0], [0], [1], [0, 0, 1, 1], [], []>} : vector<16x256xf32>, vector<256x128xf32>, vector<16x128xf32> -> vector<16x128xf32>
    %c0_5 = arith.constant 0 : index
    %c0_6 = arith.constant 0 : index
    %5 = vector.load %arg4[%c0_5, %c0_6] : memref<1x128xf32, #tpu.memory_space<vmem>>, vector<1x128xf32>
    %6 = vector.broadcast %5 : vector<1x128xf32> to vector<16x128xf32>
    %7 = arith.addf %4, %6 : vector<16x128xf32>
    %c0_7 = arith.constant 0 : index
    %c0_8 = arith.constant 0 : index
    %8 = vector.load %arg5[%c0_7, %c0_8] : memref<16x128xf32, #tpu.memory_space<vmem>>, vector<16x128xf32>
    tpu.vector_store %arg5[%c0_7, %c0_8], %7 {strides = array<i32>} : memref<16x128xf32, #tpu.memory_space<vmem>>, vector<16x128xf32>,
    return
  }
  func.func @transform_0(%arg0: i32) -> (i32, i32) {
    %c0_i32 = arith.constant 0 : i32
    %c0_i32_0 = arith.constant 0 : i32
    return %arg0, %c0_i32 : i32, i32
  }
  func.func @transform_1(%arg0: i32) -> (i32, i32) {
    %c0_i32 = arith.constant 0 : i32
    %c0_i32_0 = arith.constant 0 : i32
    %c0_i32_1 = arith.constant 0 : i32
    return %c0_i32, %c0_i32_0 : i32, i32
  }
  func.func @transform_2(%arg0: i32) -> (i32, i32) {
    %c0_i32 = arith.constant 0 : i32
    %c0_i32_0 = arith.constant 0 : i32
    %c0_i32_1 = arith.constant 0 : i32
    return %c0_i32, %c0_i32_0 : i32, i32
  }
  func.func @transform_3(%arg0: i32) -> (i32, i32) {
    %c0_i32 = arith.constant 0 : i32
    %c0_i32_0 = arith.constant 0 : i32
    %c0_i32_1 = arith.constant 0 : i32
    return %c0_i32, %c0_i32_0 : i32, i32
  }
  func.func @transform_4(%arg0: i32) -> (i32, i32) {
    %c0_i32 = arith.constant 0 : i32
    %c0_i32_0 = arith.constant 0 : i32
    return %arg0, %c0_i32 : i32, i32
  }
}

</mosaic_0001>

<bundles_post_ra>
// kernel: tpu_custom_call.1
= control target key start
LH: loop header
LB: loop body
LE: loop exit
PB: predicated region body
PF: predicated region fallthrough
CT: control target
= control target key end

     0   :  { %9 = vsyncpa [#allocation3], 0  ;;  %s485_s0 = inlined_call_operand.hbm [shape: f32[16,128], index: 0, kind: input, shape index: {}]   ;;  %s486_s1 = inlined_call_operand.hbm [shape: f32[16,128], index: 1, kind: input, shape index: {}]   ;;  %s487_s2 = inlined_call_operand.hbm [shape: f32[256,128], index: 2, kind: input, shape index: {}]   ;;  %s488_s3 = inlined_call_operand.vmem [shape: f32[1,128], index: 3, kind: input, shape index: {}]   ;;  %s489_s4 = inlined_call_operand.hbm [shape: f32[16,128], index: 4, kind: output, shape index: {}]  }
   0x1   :  { %10 = vsyncpa [#allocation6], 0 }
   0x2   :  { %11 = vsyncpa [#allocation4], 0  ;;  %s384_s15 = smov [#allocation5]   ;;  %s385_s17 = smov [#allocation2]  }
   0x3   :  { %s29_s16 = sshll.u32 %s384_s15, 4  ;;  %s17_s18 = sshll.u32 %s385_s17, 4  ;;  %s30_s16 = int_to_ptr.vmem [resolvable:$true] %s29_s16  ;;  %s415_s18 = int_to_ptr.vmem [resolvable:$true] %s17_s18 }
   0x4   :  { %s290_s21 = scalar_lea.hbm %s486_s1, 256 }
   0x5   :  { %p291_p0 = scmp.ne.s32.totalorder %s486_s1, %s290_s21  ;;  %p294_p1 = scmp.lt.u32.totalorder %s290_s21, %s486_s1 }
   0x7   :  { %p296_p2 = pnand %p294_p1, %p291_p0 }
   0x9   :  { %299 = shalt.err (!%p296_p2)
}
   0xa   :  { %s300_s26 = scalar_lea.vmem %s30_s16, 256  ;;  %p305_p4 = scmp.lt.s32.totalorder %s30_s16, %s30_s16 }
   0xb   :  { %p301_p3 = scmp.ne.s32.totalorder %s30_s16, %s300_s26  ;;  %p306_p5 = scmp.lt.s32.totalorder %s300_s26, %s300_s26 }
   0xd   :  { %p307_p6 = por %p306_p5, %p305_p4 }
   0xf   :  { %p308_p7 = pnand %p307_p6, %p301_p3 }
  0x11   :  { %311 = shalt.err (!%p308_p7)
}
  0x12   :  { %s386_s27 = smov 128   ;;  %s387_s28 = smov 8  }
  0x13   :  { %35 = dma.hbm_to_vmem [thread:$0]  %s486_s1, 256, %s30_s16, [#allocation6], %s386_s27, %s386_s27, %s387_s28  }
  0x14   :  { %s312_s7 = scalar_lea.hbm %s485_s0, 256 }
  0x15   :  { %p313_p8 = scmp.ne.s32.totalorder %s485_s0, %s312_s7  ;;  %p316_p9 = scmp.lt.u32.totalorder %s312_s7, %s485_s0 }
  0x17   :  { %p318_p10 = pnand %p316_p9, %p313_p8 }
  0x19   :  { %321 = shalt.err (!%p318_p10)
}
  0x1a   :  { %s322_s12 = scalar_lea.vmem %s415_s18, 256  ;;  %p327_p12 = scmp.lt.s32.totalorder %s415_s18, %s415_s18 }
  0x1b   :  { %p323_p11 = scmp.ne.s32.totalorder %s415_s18, %s322_s12  ;;  %p328_p13 = scmp.lt.s32.totalorder %s322_s12, %s322_s12 }
  0x1d   :  { %p329_p0 = por %p328_p13, %p327_p12 }
  0x1f   :  { %p330_p1 = pnand %p329_p0, %p323_p11 }
  0x21   :  { %333 = shalt.err (!%p330_p1)
}
  0x22   :  { %23 = dma.hbm_to_vmem [thread:$0]  %s485_s0, 256, %s415_s18, [#allocation3], %s386_s27, %s386_s27, %s387_s28  }
  0x23   :  { %s388_s14 = smov [#allocation7]   ;;  %s334_s19 = scalar_lea.hbm %s487_s2, 4096 }
  0x24   :  { %s41_s15 = sshll.u32 %s388_s14, 4  ;;  %p335_p2 = scmp.ne.s32.totalorder %s487_s2, %s334_s19  ;;  %s42_s15 = int_to_ptr.vmem [resolvable:$true] %s41_s15 }
  0x25   :  { %p338_p3 = scmp.lt.u32.totalorder %s334_s19, %s487_s2 }
  0x27   :  { %p340_p4 = pnand %p338_p3, %p335_p2 }
  0x29   :  { %343 = shalt.err (!%p340_p4)
}
  0x2a   :  { %s344_s24 = scalar_lea.vmem %s42_s15, 4096  ;;  %p349_p6 = scmp.lt.s32.totalorder %s42_s15, %s42_s15 }
  0x2b   :  { %p345_p5 = scmp.ne.s32.totalorder %s42_s15, %s344_s24  ;;  %p350_p7 = scmp.lt.s32.totalorder %s344_s24, %s344_s24 }
  0x2d   :  { %p351_p8 = por %p350_p7, %p349_p6 }
  0x2f   :  { %p352_p9 = pnand %p351_p8, %p345_p5 }
  0x31   :  { %355 = shalt.err (!%p352_p9)
}
  0x32   :  { %47 = dma.hbm_to_vmem [thread:$0]  %s487_s2, 4096, %s42_s15, [#allocation6], %s386_s27, %s386_s27, %s387_s28  }
  0x33   :  { %378 = dma.done.wait [#allocation3], 256  }
  0x34   :  { %379 = vsyncadd [#allocation3], 4294967040 }
  0x35   :  { %380 = dma.done.wait [#allocation6], 4352  }
  0x36   :  { %381 = vsyncadd [#allocation6], 4294962944  ;;  %v79_v0 = vld [vmem:[#allocation7 + $0x80] sm:$0xff]  ;;  %v80_v1 = vld [vmem:[#allocation7 + $0x88] sm:$0xff]  ;;  %s389_s26 = smov [#allocation8]  }
  0x37   :  { %v63_v2 = vld [vmem:[#allocation7] sm:$0xff]  ;;  %v236_v3 = vpack.c.bf16 %v80_v1, %v79_v0  ;;  %v64_v4 = vld [vmem:[#allocation7 + $0x8] sm:$0xff]  ;;  %v81_v5 = vld [vmem:[#allocation7 + $0x90] sm:$0xff]  ;;  %s184_s29 = sshll.u32 %s389_s26, 4  ;;  %s185_s29 = int_to_ptr.vmem [resolvable:$true] %s184_s29 }
  0x38   :  { %v82_v6 = vld [vmem:[#allocation7 + $0x98] sm:$0xff]  ;;  %v238_v7 = vpack.c.bf16 %v64_v4, %v63_v2  ;;  %v65_v9 = vld [vmem:[#allocation7 + $0x10] sm:$0xff]  ;;  %v83_v11 = vld [vmem:[#allocation7 + $0xa0] sm:$0xff]  ;;  %s356_s30 = scalar_lea.vmem %s185_s29, 256  ;;  %p361_p11 = scmp.lt.s32.totalorder %s185_s29, %s185_s29 }
  0x39   :  { %v240_v8 = vpack.c.bf16 %v82_v6, %v81_v5  ;;  %v66_v10 = vld [vmem:[#allocation7 + $0x18] sm:$0xff]  ;;  %237 = vmatprep.subr.bf16.mxu0 %v236_v3  ;;  %268 = vmatprep.subr.bf16.mxu1 %v236_v3  ;;  %v84_v12 = vld [vmem:[#allocation7 + $0xa8] sm:$0xff]  ;;  %v67_v15 = vld [vmem:[#allocation7 + $0x20] sm:$0xff]  ;;  %p357_p10 = scmp.ne.s32.totalorder %s185_s29, %s356_s30  ;;  %p362_p12 = scmp.lt.s32.totalorder %s356_s30, %s356_s30 }
  0x3a   :  { %239 = vmatpush3.bf16.msra.mxu0 %v238_v7  ;;  %276 = vmatpush3.bf16.msra.mxu1 %v238_v7  ;;  %v242_v13 = vpack.c.bf16 %v66_v10, %v65_v9  ;;  %v244_v14 = vpack.c.bf16 %v84_v12, %v83_v11  ;;  %v68_v16 = vld [vmem:[#allocation7 + $0x28] sm:$0xff]  ;;  %v85_v17 = vld [vmem:[#allocation7 + $0xb0] sm:$0xff]  ;;  %v86_v18 = vld [vmem:[#allocation7 + $0xb8] sm:$0xff] }
  0x3b   :  { %241 = vmatprep.subr.bf16.mxu0 %v240_v8  ;;  %269 = vmatprep.subr.bf16.mxu1 %v240_v8  ;;  %v246_v19 = vpack.c.bf16 %v68_v16, %v67_v15  ;;  %v248_v20 = vpack.c.bf16 %v86_v18, %v85_v17  ;;  %v69_v21 = vld [vmem:[#allocation7 + $0x30] sm:$0xff]  ;;  %v70_v22 = vld [vmem:[#allocation7 + $0x38] sm:$0xff]  ;;  %v87_v23 = vld [vmem:[#allocation7 + $0xc0] sm:$0xff]  ;;  %p363_p13 = por %p362_p12, %p361_p11 }
  0x3c   :  { %v88_v24 = vld [vmem:[#allocation7 + $0xc8] sm:$0xff]  ;;  %v61_v25 = vld [vmem:[#allocation5] sm:$0xff]  ;;  %v62_v26 = vld [vmem:[#allocation5 + $0x8] sm:$0xff]  ;;  %v250_v27 = vpack.c.bf16 %v70_v22, %v69_v21 }
  0x3d   :  { %166 = vmatprep.mubr.f32.mxu0 %v61_v25  ;;  %v252_v28 = vpack.c.bf16 %v88_v24, %v87_v23  ;;  %v71_v29 = vld [vmem:[#allocation7 + $0x40] sm:$0xff]  ;;  %v72_v30 = vld [vmem:[#allocation7 + $0x48] sm:$0xff]  ;;  %v89_v31 = vld [vmem:[#allocation7 + $0xd0] sm:$0xff]  ;;  %171 = vmatprep.mubr.f32.mxu1 %v62_v26  ;;  %p364_p0 = pnand %p363_p13, %p357_p10 }
  0x3e   :  { %243 = vmatpush3.bf16.msra.mxu0 %v242_v13  ;;  %277 = vmatpush3.bf16.msra.mxu1 %v242_v13  ;;  %v90_v32 = vld [vmem:[#allocation7 + $0xd8] sm:$0xff]  ;;  %v254_v33 = vpack.c.bf16 %v72_v30, %v71_v29  ;;  %v73_v35 = vld [vmem:[#allocation7 + $0x50] sm:$0xff]  ;;  %v91_v37 = vld [vmem:[#allocation7 + $0xe0] sm:$0xff] }
  0x3f   :  { %245 = vmatprep.subr.bf16.mxu0 %v244_v14  ;;  %270 = vmatprep.subr.bf16.mxu1 %v244_v14  ;;  %v256_v34 = vpack.c.bf16 %v90_v32, %v89_v31  ;;  %v74_v36 = vld [vmem:[#allocation7 + $0x58] sm:$0xff]  ;;  %v92_v38 = vld [vmem:[#allocation7 + $0xe8] sm:$0xff]  ;;  %v75_v41 = vld [vmem:[#allocation7 + $0x60] sm:$0xff] }
  0x40   :  { %v258_v39 = vpack.c.bf16 %v74_v36, %v73_v35  ;;  %v260_v40 = vpack.c.bf16 %v92_v38, %v91_v37  ;;  %v76_v42 = vld [vmem:[#allocation7 + $0x68] sm:$0xff]  ;;  %v93_v43 = vld [vmem:[#allocation7 + $0xf0] sm:$0xff]  ;;  %v94_v44 = vld [vmem:[#allocation7 + $0xf8] sm:$0xff] }
  0x41   :  { %v262_v45 = vpack.c.bf16 %v76_v42, %v75_v41  ;;  %v264_v46 = vpack.c.bf16 %v94_v44, %v93_v43  ;;  %v77_v47 = vld [vmem:[#allocation7 + $0x70] sm:$0xff]  ;;  %v78_v48 = vld [vmem:[#allocation7 + $0x78] sm:$0xff]  ;;  %v59_v50 = vld [vmem:[#allocation2] sm:$0xff] }
  0x42   :  { %247 = vmatpush3.bf16.msra.mxu0 %v246_v19  ;;  %278 = vmatpush3.bf16.msra.mxu1 %v246_v19  ;;  %v266_v49 = vpack.c.bf16 %v78_v48, %v77_v47  ;;  %v60_v51 = vld [vmem:[#allocation2 + $0x8] sm:$0xff]  ;;  %v197_v54 = vld [vmem:[%s488_s3] ss:$0 sm:$0xff] }
  0x43   :  { %249 = vmatprep.subr.bf16.mxu0 %v248_v20  ;;  %271 = vmatprep.subr.bf16.mxu1 %v248_v20 }
  0x46   :  { %251 = vmatpush3.bf16.msra.mxu0 %v250_v27  ;;  %279 = vmatpush3.bf16.msra.mxu1 %v250_v27 }
  0x47   :  { %253 = vmatprep.subr.bf16.mxu0 %v252_v28  ;;  %272 = vmatprep.subr.bf16.mxu1 %v252_v28 }
  0x4a   :  { %255 = vmatpush3.bf16.msra.mxu0 %v254_v33  ;;  %280 = vmatpush3.bf16.msra.mxu1 %v254_v33 }
  0x4b   :  { %257 = vmatprep.subr.bf16.mxu0 %v256_v34  ;;  %273 = vmatprep.subr.bf16.mxu1 %v256_v34 }
  0x4e   :  { %259 = vmatpush3.bf16.msra.mxu0 %v258_v39  ;;  %281 = vmatpush3.bf16.msra.mxu1 %v258_v39 }
  0x4f   :  { %261 = vmatprep.subr.bf16.mxu0 %v260_v40  ;;  %274 = vmatprep.subr.bf16.mxu1 %v260_v40 }
  0x52   :  { %263 = vmatpush3.bf16.msra.mxu0 %v262_v45  ;;  %282 = vmatpush3.bf16.msra.mxu1 %v262_v45 }
  0x53   :  { %265 = vmatprep.subr.bf16.mxu0 %v264_v46  ;;  %275 = vmatprep.subr.bf16.mxu1 %v264_v46 }
  0x56   :  { %267 = vmatpush3.bf16.msra.mxu0 %v266_v49  ;;  %283 = vmatpush3.bf16.msra.mxu1 %v266_v49 }
  0x59   :  { %167 = vmatmul.mubr.f32.vlgmr.msra.gmra.mrb[0].mxu0 %v59_v50  ;;  %172 = vmatmul.mubr.f32.vlgmr.msra.gmra.mrb[0].mxu1 %v60_v51 }
 0x12c   :  { %v230_v52 = vpop.f32.mrb[0].mxu0  ;;  %v233_v53 = vpop.f32.mrb[0].mxu1 }
 0x12d   :  { %v231_v55 = vpop.f32.mrb[1].mxu0  ;;  %v234_v56 = vpop.f32.mrb[1].mxu1 }
 0x12e   :  { %v232_v57 = vadd.f32 %v231_v55, %v230_v52  ;;  %v235_v58 = vadd.f32 %v234_v56, %v233_v53 }
 0x130   :  { %v169_v59 = vadd.f32 %v232_v57, %v197_v54  ;;  %v174_v60 = vadd.f32 %v235_v58, %v197_v54 }
 0x132   :  { %177 = vst [vmem:[#allocation8] sm:$0xff] %v169_v59  ;;  %178 = vst [vmem:[#allocation8 + $0x8] sm:$0xff] %v174_v60 }
 0x133   :  { %367 = shalt.err (!%p364_p0)
}
 0x134   :  { %s368_s6 = scalar_lea.hbm %s489_s4, 256 }
 0x135   :  { %p369_p1 = scmp.ne.s32.totalorder %s489_s4, %s368_s6  ;;  %p372_p2 = scmp.lt.u32.totalorder %s368_s6, %s489_s4 }
 0x137   :  { %p374_p3 = pnand %p372_p2, %p369_p1 }
 0x139   :  { %377 = shalt.err (!%p374_p3)
}
 0x13a   :  { %190 = dma.vmem_to_hbm [thread:$0]  %s185_s29, 256, %s489_s4, [#allocation4], %s386_s27, %s386_s27, %s387_s28  }
 0x13b   :  { %382 = dma.done.wait [#allocation4], 256  }
 0x13c   :  { %383 = vsyncadd [#allocation4], 4294967040 }
 0x13d   :  { %194 = vsyncpa [#allocation3], 1 }
 0x13e   :  { %195 = vsyncpa [#allocation6], 1 }
 0x13f   :  { %196 = vsyncpa [#allocation4], 1 }

</bundles_post_ra>
